<compile_context>
chip_gen: v5e
topology: v5e:2x2
jax: 0.10.0
libtpu: 0.0.40
codegen_flags: <defaults>
</compile_context>

<pallas_src>
import functools

import jax
import jax.numpy as jnp
from jax.experimental import pallas as pl
from jax.experimental.pallas import tpu as pltpu


def _round_up(a: int, m: int) -> int:
    return (a + m - 1) // m * m


def _sublane(itemsize: int) -> int:
    # dtype-native second-to-last tile multiple: 8 (f32), 16 (bf16), 32 (int8/fp8)
    return max(8, 32 // itemsize)


def _wgap_kernel(x_ref, w_ref, b_ref, o_ref, acc_ref, *, hw_total, hw_tile, mask_tail):
    # x_ref: (b_tile, C, hw_tile)   w_ref: (C, classes_p)   b_ref: (1, classes_p)
    # o_ref: (b_tile, classes_p)    acc_ref: (b_tile, C) float32 scratch
    k = pl.program_id(1)

    @pl.when(k == 0)
    def _():
        acc_ref[...] = jnp.zeros_like(acc_ref)

    xv = x_ref[...]
    if mask_tail:
        # Zero the out-of-range lanes of the ragged last HW tile (OOB block reads
        # are undefined).  The mask is all-true on full tiles, so it is safe (and
        # cheap VPU filler for an HBM-bound op) to apply it on every step.
        lane = jax.lax.broadcasted_iota(jnp.int32, xv.shape, dimension=2)
        xv = jnp.where(k * hw_tile + lane < hw_total, xv, jnp.zeros_like(xv))

    # Partial HW sum (XLU lane-reduce), accumulated in f32.  1/(H*W) is folded
    # into the weight in the wrapper, so raw sums are fine here.
    acc_ref[...] += jnp.sum(xv, axis=2, dtype=jnp.float32)

    @pl.when(k == pl.num_programs(1) - 1)
    def _():
        pooled = acc_ref[...].astype(w_ref.dtype)      # bf16-native MXU if x is bf16
        logits = jnp.dot(pooled, w_ref[...], preferred_element_type=jnp.float32)
        o_ref[...] = (logits + b_ref[...]).astype(o_ref.dtype)


def wgap_forward(x, weight, bias, *, support_background=False, b_tile=None, hw_tile=None):
    """WGAP forward: mean over (H, W) followed by a Linear head.

    x:      (B, C, H, W)   NCHW feature map.
    weight: (n_out, C)     nn.Linear weight (n_out = classes [+1 if support_background]).
    bias:   (n_out,)       nn.Linear bias.
    returns (B, classes) logits (background column dropped if support_background).
    """
    B, C, H, W = x.shape
    n_out = weight.shape[0]
    HW = H * W
    itemsize = jnp.dtype(x.dtype).itemsize
    LANE = 128
    sub = _sublane(itemsize)

    # Free reshape (no HBM relayout, no pad): NCHW -> (B, C, HW), HW on the lane axis.
    x_r = x.reshape(B, C, HW)

    # ---- chip-aware budgets ------------------------------------------------
    try:
        vmem_cap = int(pltpu.get_tpu_info().vmem_capacity_bytes)
    except Exception:
        vmem_cap = 64 * 1024 * 1024                      # conservative (v7x per-TC)
    big_vmem = vmem_cap >= 96 * 1024 * 1024              # v5e/v6e (128 MiB) vs v7x (64 MiB)
    target_tile = (8 if big_vmem else 4) * 1024 * 1024   # streamed x tile per buffer

    # ---- tiling --------------------------------------------------------------
    c_pad = _round_up(C, sub)
    if hw_tile is None:
        if c_pad * _round_up(HW, LANE) * itemsize <= target_tile:
            hw_tile = HW                                  # whole HW stripe per step
        else:
            hw_tile = max(LANE, (target_tile // (c_pad * itemsize)) // LANE * LANE)
    if hw_tile >= HW:
        hw_tile = HW
    elif hw_tile % LANE != 0:
        raise ValueError("hw_tile must be a multiple of 128 or cover H*W entirely")

    if b_tile is None:
        if B <= 8:
            # TODO(synk): for B <= 8 on v7x the batch axis has a single block, so one
            # TensorCore idles; splitting HW across cores needs per-core partial
            # accumulators + a combine step.
            b_tile = B
        else:
            x_slab = c_pad * _round_up(hw_tile, LANE) * itemsize   # bytes / batch elem / step
            by_vmem = max(8, (target_tile // max(x_slab, 1)) // 8 * 8)
            by_split = max(8, (_round_up(B, 8) // 2) // 8 * 8)     # >=2 batch blocks (v7x dual TC)
            b_tile = int(min(by_vmem, by_split, _round_up(B, 8)))
    if not (b_tile == B or b_tile % 8 == 0):
        raise ValueError("b_tile must equal B or be a multiple of 8")

    grid = (pl.cdiv(B, b_tile), pl.cdiv(HW, hw_tile))

    # ---- weight / bias: fold 1/(H*W); pad classes to a lane-dense width ------
    classes_p = _round_up(n_out, LANE)
    w_scaled = (weight.astype(jnp.float32).T * (1.0 / float(HW))).astype(x.dtype)  # (C, n_out)
    bias_f = bias.astype(jnp.float32)
    if classes_p != n_out:
        w_scaled = jnp.pad(w_scaled, ((0, 0), (0, classes_p - n_out)))
        bias_f = jnp.pad(bias_f, (0, classes_p - n_out))
    b2 = bias_f.reshape(1, classes_p)
    w_item = jnp.dtype(w_scaled.dtype).itemsize

    # ---- VMEM budget (true padded footprints, v7x-safe clamp) ----------------
    x_tile_b = b_tile * c_pad * _round_up(hw_tile, LANE) * itemsize
    w_b = _round_up(C, _sublane(w_item)) * classes_p * w_item
    bias_b = 8 * classes_p * 4
    out_tile_b = _round_up(b_tile, _sublane(itemsize)) * classes_p * itemsize
    acc_b = _round_up(b_tile, 8) * _round_up(C, LANE) * 4
    est = 2 * x_tile_b + 2 * (w_b + bias_b) + 2 * out_tile_b + acc_b
    vmem_ceiling = int(0.85 * vmem_cap)
    if est > vmem_ceiling:
        # TODO(synk): add a classes-tiling grid axis (weight block (C, tn)) for very
        # large C * classes heads instead of keeping the whole weight resident.
        raise ValueError(
            f"WGAP resident weight + tiles need ~{est} B of VMEM, over the "
            f"{vmem_ceiling} B budget on this chip; reduce head size or add N-tiling.")
    vmem_limit = min(max(int(est * 1.25), 32 * 1024 * 1024), vmem_ceiling)

    cost = pl.CostEstimate(
        flops=int(B * C * HW + 2 * B * C * classes_p),
        transcendentals=0,
        bytes_accessed=int(B * C * HW * itemsize + C * classes_p * w_item
                           + classes_p * 4 + B * classes_p * itemsize),
    )

    kernel = functools.partial(_wgap_kernel, hw_total=HW, hw_tile=hw_tile,
                               mask_tail=(HW % hw_tile != 0))

    def _call(single_buffer_resident: bool):
        res_kw = {"pipeline_mode": pl.Buffered(1)} if single_buffer_resident else {}
        return pl.pallas_call(
            kernel,
            out_shape=jax.ShapeDtypeStruct((B, classes_p), x.dtype),
            grid_spec=pltpu.PrefetchScalarGridSpec(
                num_scalar_prefetch=0,
                grid=grid,
                in_specs=[
                    pl.BlockSpec((b_tile, C, hw_tile), lambda b, k: (b, 0, k)),
                    pl.BlockSpec((C, classes_p), lambda b, k: (0, 0), **res_kw),   # resident
                    pl.BlockSpec((1, classes_p), lambda b, k: (0, 0), **res_kw),   # resident
                ],
                out_specs=pl.BlockSpec((b_tile, classes_p), lambda b, k: (b, 0)),
                scratch_shapes=[pltpu.VMEM((b_tile, C), jnp.float32)],
            ),
            compiler_params=pltpu.CompilerParams(
                dimension_semantics=("parallel", "arbitrary"),
                vmem_limit_bytes=vmem_limit,
            ),
            cost_estimate=cost,
        )(x_r, w_scaled, b2)

    try:
        out = _call(True)      # resident weight/bias single-buffered: halves their VMEM
    except Exception:
        out = _call(False)     # fallback if pipeline_mode / Buffered isn't supported here

    out = out[:, :n_out]
    if support_background:
        out = out[:, 1:]
    return out


if __name__ == "__main__":
    key = jax.random.PRNGKey(0)
    kx, kw, kb, kx2 = jax.random.split(key, 4)

    # Small shapes consistent with the module.
    B, C, H, W = 2, 4, 16, 16
    classes = 3

    x = jax.random.normal(kx, (B, C, H, W), dtype=jnp.float32)
    bound = 1.0 / jnp.sqrt(jnp.float32(C))          # nn.Linear default init range
    weight = jax.random.uniform(kw, (classes, C), minval=-bound, maxval=bound,
                                dtype=jnp.float32)
    bias = jax.random.uniform(kb, (classes,), minval=-bound, maxval=bound,
                              dtype=jnp.float32)

    logits = wgap_forward(x, weight, bias)
    jax.block_until_ready(logits)
    ref = jnp.mean(x, axis=(2, 3)) @ weight.T + bias
    assert logits.shape == (B, classes)
    assert jnp.allclose(logits, ref, atol=2e-5, rtol=2e-5)

    # Ragged-HW path: HW = 18*18 = 324 with forced hw_tile=128 exercises the
    # multi-step accumulation + in-kernel tail mask, still with no pad/relayout of x.
    x2 = jax.random.normal(kx2, (B, C, 18, 18), dtype=jnp.float32)
    logits2 = wgap_forward(x2, weight, bias, hw_tile=128)
    jax.block_until_ready(logits2)
    ref2 = jnp.mean(x2, axis=(2, 3)) @ weight.T + bias
    assert jnp.allclose(logits2, ref2, atol=2e-5, rtol=2e-5)

    print("KERNEL_OK")
</pallas_src>

<mosaic_0001>
module attributes {stable_mosaic.version = 11 : i64} {
  func.func @_wgap_kernel(%arg0: i32, %arg1: i32, %arg2: memref<2x4x256xf32, #tpu.memory_space<vmem>>, %arg3: memref<4x128xf32, #tpu.memory_space<vmem>>, %arg4: memref<1x128xf32, #tpu.memory_space<vmem>>, %arg5: memref<2x128xf32, #tpu.memory_space<vmem>>, %arg6: memref<2x4xf32, #tpu.memory_space<vmem>>) attributes {dimension_semantics = [#tpu.dimension_semantics<parallel>, #tpu.dimension_semantics<arbitrary>], iteration_bounds = array<i64: 1, 1>, scalar_prefetch = 0 : i64, scratch_operands = 1 : i64, tpu.core_type = #tpu.core_type<tc>, window_params = [{transform_indices = @transform_0, window_bounds = array<i64: 2, 4, 256>}, {pipeline_mode = #tpu.pipeline_mode<synchronous>, transform_indices = @transform_1, window_bounds = array<i64: 4, 128>}, {pipeline_mode = #tpu.pipeline_mode<synchronous>, transform_indices = @transform_2, window_bounds = array<i64: 1, 128>}, {transform_indices = @transform_3, window_bounds = array<i64: 2, 128>}]} {
    %c0_i32 = arith.constant 0 : i32
    %0 = arith.cmpi eq, %arg1, %c0_i32 : i32
    %1 = arith.extui %0 : i1 to i32
    %c0_i32_0 = arith.constant 0 : i32
    %2 = arith.cmpi ne, %1, %c0_i32_0 : i32
    scf.if %2 {
      %cst_9 = arith.constant 0.000000e+00 : f32
      %11 = vector.broadcast %cst_9 : f32 to vector<2x4xf32>
      %c0_10 = arith.constant 0 : index
      %c0_11 = arith.constant 0 : index
      %12 = vector.load %arg6[%c0_10, %c0_11] : memref<2x4xf32, #tpu.memory_space<vmem>>, vector<2x4xf32>
      tpu.vector_store %arg6[%c0_10, %c0_11], %11 {strides = array<i32>} : memref<2x4xf32, #tpu.memory_space<vmem>>, vector<2x4xf32>,
    } else {
    }
    %c0 = arith.constant 0 : index
    %c0_1 = arith.constant 0 : index
    %c0_2 = arith.constant 0 : index
    %3 = vector.load %arg2[%c0, %c0_1, %c0_2] : memref<2x4x256xf32, #tpu.memory_space<vmem>>, vector<2x4x256xf32>
    %c0_3 = arith.constant 0 : index
    %c0_4 = arith.constant 0 : index
    %4 = vector.load %arg6[%c0_3, %c0_4] : memref<2x4xf32, #tpu.memory_space<vmem>>, vector<2x4xf32>
    %cst = arith.constant dense<0.000000e+00> : vector<2x4xf32>
    %5 = vector.multi_reduction <add>, %3, %cst [2] : vector<2x4x256xf32> to vector<2x4xf32>
    %6 = arith.addf %4, %5 : vector<2x4xf32>
    %c0_5 = arith.constant 0 : index
    %c0_6 = arith.constant 0 : index
    %7 = vector.load %arg6[%c0_5, %c0_6] : memref<2x4xf32, #tpu.memory_space<vmem>>, vector<2x4xf32>
    tpu.vector_store %arg6[%c0_5, %c0_6], %6 {strides = array<i32>} : memref<2x4xf32, #tpu.memory_space<vmem>>, vector<2x4xf32>,
    %c0_i32_7 = arith.constant 0 : i32
    %8 = arith.cmpi eq, %arg1, %c0_i32_7 : i32
    %9 = arith.extui %8 : i1 to i32
    %c0_i32_8 = arith.constant 0 : i32
    %10 = arith.cmpi ne, %9, %c0_i32_8 : i32
    scf.if %10 {
      %c0_9 = arith.constant 0 : index
      %c0_10 = arith.constant 0 : index
      %11 = vector.load %arg6[%c0_9, %c0_10] : memref<2x4xf32, #tpu.memory_space<vmem>>, vector<2x4xf32>
      %c0_11 = arith.constant 0 : index
      %c0_12 = arith.constant 0 : index
      %12 = vector.load %arg3[%c0_11, %c0_12] : memref<4x128xf32, #tpu.memory_space<vmem>>, vector<4x128xf32>
      %cst_13 = arith.constant dense<0.000000e+00> : vector<2x128xf32>
      %13 = tpu.matmul %11, %12, %cst_13 {dimension_numbers = #tpu.dot_dimension_numbers<[1], [0], [0], [1], [0, 0, 1, 1], [], []>} : vector<2x4xf32>, vector<4x128xf32>, vector<2x128xf32> -> vector<2x128xf32>
      %c0_14 = arith.constant 0 : index
      %c0_15 = arith.constant 0 : index
      %14 = vector.load %arg4[%c0_14, %c0_15] : memref<1x128xf32, #tpu.memory_space<vmem>>, vector<1x128xf32>
      %15 = vector.broadcast %14 : vector<1x128xf32> to vector<2x128xf32>
      %16 = arith.addf %13, %15 : vector<2x128xf32>
      %c0_16 = arith.constant 0 : index
      %c0_17 = arith.constant 0 : index
      %17 = vector.load %arg5[%c0_16, %c0_17] : memref<2x128xf32, #tpu.memory_space<vmem>>, vector<2x128xf32>
      tpu.vector_store %arg5[%c0_16, %c0_17], %16 {strides = array<i32>} : memref<2x128xf32, #tpu.memory_space<vmem>>, vector<2x128xf32>,
    } else {
    }
    return
  }
  func.func @transform_0(%arg0: i32, %arg1: i32) -> (i32, i32, i32) {
    %c0_i32 = arith.constant 0 : i32
    %c0_i32_0 = arith.constant 0 : i32
    return %arg0, %c0_i32, %arg1 : i32, i32, i32
  }
  func.func @transform_1(%arg0: i32, %arg1: i32) -> (i32, i32) {
    %c0_i32 = arith.constant 0 : i32
    %c0_i32_0 = arith.constant 0 : i32
    %c0_i32_1 = arith.constant 0 : i32
    return %c0_i32, %c0_i32_0 : i32, i32
  }
  func.func @transform_2(%arg0: i32, %arg1: i32) -> (i32, i32) {
    %c0_i32 = arith.constant 0 : i32
    %c0_i32_0 = arith.constant 0 : i32
    %c0_i32_1 = arith.constant 0 : i32
    return %c0_i32, %c0_i32_0 : i32, i32
  }
  func.func @transform_3(%arg0: i32, %arg1: i32) -> (i32, i32) {
    %c0_i32 = arith.constant 0 : i32
    %c0_i32_0 = arith.constant 0 : i32
    return %arg0, %c0_i32 : i32, i32
  }
}

module attributes {stable_mosaic.version = 11 : i64} {
  func.func @_wgap_kernel(%arg0: i32, %arg1: i32, %arg2: memref<2x4x256xf32, #tpu.memory_space<vmem>>, %arg3: memref<4x128xf32, #tpu.memory_space<vmem>>, %arg4: memref<1x128xf32, #tpu.memory_space<vmem>>, %arg5: memref<2x128xf32, #tpu.memory_space<vmem>>, %arg6: memref<2x4xf32, #tpu.memory_space<vmem>>) attributes {dimension_semantics = [#tpu.dimension_semantics<parallel>, #tpu.dimension_semantics<arbitrary>], iteration_bounds = array<i64: 1, 1>, scalar_prefetch = 0 : i64, scratch_operands = 1 : i64, tpu.core_type = #tpu.core_type<tc>, window_params = [{transform_indices = @transform_0, window_bounds = array<i64: 2, 4, 256>}, {pipeline_mode = #tpu.pipeline_mode<synchronous>, transform_indices = @transform_1, window_bounds = array<i64: 4, 128>}, {pipeline_mode = #tpu.pipeline_mode<synchronous>, transform_indices = @transform_2, window_bounds = array<i64: 1, 128>}, {transform_indices = @transform_3, window_bounds = array<i64: 2, 128>}]} {
    %c0_i32 = arith.constant 0 : i32
    %0 = arith.cmpi eq, %arg1, %c0_i32 : i32
    %1 = arith.extui %0 : i1 to i32
    %c0_i32_0 = arith.constant 0 : i32
    %2 = arith.cmpi ne, %1, %c0_i32_0 : i32
    scf.if %2 {
      %cst_9 = arith.constant 0.000000e+00 : f32
      %11 = vector.broadcast %cst_9 : f32 to vector<2x4xf32>
      %c0_10 = arith.constant 0 : index
      %c0_11 = arith.constant 0 : index
      %12 = vector.load %arg6[%c0_10, %c0_11] : memref<2x4xf32, #tpu.memory_space<vmem>>, vector<2x4xf32>
      tpu.vector_store %arg6[%c0_10, %c0_11], %11 {strides = array<i32>} : memref<2x4xf32, #tpu.memory_space<vmem>>, vector<2x4xf32>,
    } else {
    }
    %c0 = arith.constant 0 : index
    %c0_1 = arith.constant 0 : index
    %c0_2 = arith.constant 0 : index
    %3 = vector.load %arg2[%c0, %c0_1, %c0_2] : memref<2x4x256xf32, #tpu.memory_space<vmem>>, vector<2x4x256xf32>
    %c0_3 = arith.constant 0 : index
    %c0_4 = arith.constant 0 : index
    %4 = vector.load %arg6[%c0_3, %c0_4] : memref<2x4xf32, #tpu.memory_space<vmem>>, vector<2x4xf32>
    %cst = arith.constant dense<0.000000e+00> : vector<2x4xf32>
    %5 = vector.multi_reduction <add>, %3, %cst [2] : vector<2x4x256xf32> to vector<2x4xf32>
    %6 = arith.addf %4, %5 : vector<2x4xf32>
    %c0_5 = arith.constant 0 : index
    %c0_6 = arith.constant 0 : index
    %7 = vector.load %arg6[%c0_5, %c0_6] : memref<2x4xf32, #tpu.memory_space<vmem>>, vector<2x4xf32>
    tpu.vector_store %arg6[%c0_5, %c0_6], %6 {strides = array<i32>} : memref<2x4xf32, #tpu.memory_space<vmem>>, vector<2x4xf32>,
    %c0_i32_7 = arith.constant 0 : i32
    %8 = arith.cmpi eq, %arg1, %c0_i32_7 : i32
    %9 = arith.extui %8 : i1 to i32
    %c0_i32_8 = arith.constant 0 : i32
    %10 = arith.cmpi ne, %9, %c0_i32_8 : i32
    scf.if %10 {
      %c0_9 = arith.constant 0 : index
      %c0_10 = arith.constant 0 : index
      %11 = vector.load %arg6[%c0_9, %c0_10] : memref<2x4xf32, #tpu.memory_space<vmem>>, vector<2x4xf32>
      %c0_11 = arith.constant 0 : index
      %c0_12 = arith.constant 0 : index
      %12 = vector.load %arg3[%c0_11, %c0_12] : memref<4x128xf32, #tpu.memory_space<vmem>>, vector<4x128xf32>
      %cst_13 = arith.constant dense<0.000000e+00> : vector<2x128xf32>
      %13 = tpu.matmul %11, %12, %cst_13 {dimension_numbers = #tpu.dot_dimension_numbers<[1], [0], [0], [1], [0, 0, 1, 1], [], []>} : vector<2x4xf32>, vector<4x128xf32>, vector<2x128xf32> -> vector<2x128xf32>
      %c0_14 = arith.constant 0 : index
      %c0_15 = arith.constant 0 : index
      %14 = vector.load %arg4[%c0_14, %c0_15] : memref<1x128xf32, #tpu.memory_space<vmem>>, vector<1x128xf32>
      %15 = vector.broadcast %14 : vector<1x128xf32> to vector<2x128xf32>
      %16 = arith.addf %13, %15 : vector<2x128xf32>
      %c0_16 = arith.constant 0 : index
      %c0_17 = arith.constant 0 : index
      %17 = vector.load %arg5[%c0_16, %c0_17] : memref<2x128xf32, #tpu.memory_space<vmem>>, vector<2x128xf32>
      tpu.vector_store %arg5[%c0_16, %c0_17], %16 {strides = array<i32>} : memref<2x128xf32, #tpu.memory_space<vmem>>, vector<2x128xf32>,
    } else {
    }
    return
  }
  func.func @transform_0(%arg0: i32, %arg1: i32) -> (i32, i32, i32) {
    %c0_i32 = arith.constant 0 : i32
    %c0_i32_0 = arith.constant 0 : i32
    return %arg0, %c0_i32, %arg1 : i32, i32, i32
  }
  func.func @transform_1(%arg0: i32, %arg1: i32) -> (i32, i32) {
    %c0_i32 = arith.constant 0 : i32
    %c0_i32_0 = arith.constant 0 : i32
    %c0_i32_1 = arith.constant 0 : i32
    return %c0_i32, %c0_i32_0 : i32, i32
  }
  func.func @transform_2(%arg0: i32, %arg1: i32) -> (i32, i32) {
    %c0_i32 = arith.constant 0 : i32
    %c0_i32_0 = arith.constant 0 : i32
    %c0_i32_1 = arith.constant 0 : i32
    return %c0_i32, %c0_i32_0 : i32, i32
  }
  func.func @transform_3(%arg0: i32, %arg1: i32) -> (i32, i32) {
    %c0_i32 = arith.constant 0 : i32
    %c0_i32_0 = arith.constant 0 : i32
    return %arg0, %c0_i32 : i32, i32
  }
}

</mosaic_0001>

<bundles_post_ra>
// kernel: tpu_custom_call.1
= control target key start
LH: loop header
LB: loop body
LE: loop exit
PB: predicated region body
PF: predicated region fallthrough
CT: control target
= control target key end

     0   :  { %8 = vsyncpa [#allocation4], 0  ;;  %s275_s0 = inlined_call_operand.hbm [shape: f32[2,4,256], index: 0, kind: input, shape index: {}]   ;;  %s276_s1 = inlined_call_operand.hbm [shape: f32[4,128], index: 1, kind: input, shape index: {}]   ;;  %s277_s2 = inlined_call_operand.vmem [shape: f32[1,128], index: 2, kind: input, shape index: {}]   ;;  %s278_s3 = inlined_call_operand.hbm [shape: f32[2,128], index: 3, kind: output, shape index: {}]  }
   0x1   :  { %9 = vsyncpa [#allocation7], 0 }
   0x2   :  { %10 = vsyncpa [#allocation5], 0  ;;  %s15_s14 = sshll.u32 %s275_s0, 4  ;;  %s232_s15 = smov [#allocation3]   ;;  %s16_s14 = int_to_ptr.hbm [resolvable:$true] %s15_s14 }
   0x3   :  { %s17_s16 = sshll.u32 %s232_s15, 4  ;;  %s29_s19 = sshll.u32 %s276_s1, 4  ;;  %s18_s16 = int_to_ptr.vmem [resolvable:$true] %s17_s16  ;;  %s30_s19 = int_to_ptr.hbm [resolvable:$true] %s29_s19 }
   0x4   :  { %s233_s20 = smov 128   ;;  %s234_s21 = smov 8  }
   0x5   :  { %23 = dma.hbm_to_vmem [thread:$0]  %s16_s14, 256, %s18_s16, [#allocation4], %s233_s20, %s233_s20, %s234_s21  }
   0x6   :  { %s235_s22 = smov [#allocation6]  }
   0x7   :  { %s31_s23 = sshll.u32 %s235_s22, 4  ;;  %s32_s23 = int_to_ptr.vmem [resolvable:$true] %s31_s23 }
   0x8   :  { %34 = dma.hbm_to_vmem [thread:$0]  %s30_s19, 64, %s32_s23, [#allocation7]  }
   0x9   :  { %226 = dma.done.wait [#allocation4], 256  }
   0xa   :  { %227 = vsyncadd [#allocation4], 4294967040 }
   0xb   :  { %228 = dma.done.wait [#allocation7], 64  }
   0xc   :  { %229 = vsyncadd [#allocation7], 4294967232  ;;  %v51_v0 = vld [vmem:[#allocation3] sm:$0xff]  ;;  %v52_v1 = vld [vmem:[#allocation3 + $0x8] sm:$0xff]  ;;  %vm67_vm0 = vcmask 1043456   ;;  %vm49_vm1 = vcmask 25600   ;;  %v80_v15 = vlaneseq }
   0xd   :  { %56 = vst [vmem:[#allocation1] ss:$2 sm:$0xff] %v51_v0  ;;  %v236_v12 = vmov 0.0   ;;  %v94_v13 = vld [vmem:[#allocation6] sm:$0xf]  ;;  %vm84_vm2 = vcmask 1041409  }
   0xe   :  { %60 = vst [vmem:[#allocation1 + $0x10] ss:$2 sm:$0xff] %v52_v1  ;;  %145 = vmatpush.msk.msra.mxu0 %vm67_vm0, %v94_v13  ;;  %v81_v16 = vand.u32 127, %v80_v15  ;;  %vm99_vm3 = vcmask 31744   ;;  %v153_v24 = vld [vmem:[%s277_s2] ss:$0 sm:$0xff] }
   0xf   :  { %50 = vst.msk [vmem:[#allocation2] sm:$0x3] %vm49_vm1, %v236_v12  ;;  %s237_s24 = smov [#allocation8]   ;;  %s134_s28 = sshll.u32 %s278_s3, 4  ;;  %s135_s28 = int_to_ptr.hbm [resolvable:$true] %s134_s28 }
  0x10   :  { %s132_s25 = sshll.u32 %s237_s24, 4  ;;  %s133_s25 = int_to_ptr.vmem [resolvable:$true] %s132_s25 }
  0x14   :  { %v57_v2 = vld.sshfl [vmem:[#allocation1] sm:$0xff pattern:$0x75316420]  ;;  %v58_v3 = vld.sshfl [vmem:[#allocation1 + $0x8] sm:$0xff pattern:$0x75316420] }
  0x15   :  { %v68_v4 = vsel %vm67_vm0, %v57_v2, 0.0  ;;  %v69_v5 = vsel %vm67_vm0, %v58_v3, 0.0  ;;  %v61_v7 = vld.sshfl [vmem:[#allocation1 + $0x10] sm:$0xff pattern:$0x75316420] }
  0x16   :  { %v70_v6 = vadd.f32 %v69_v5, %v68_v4  ;;  %v62_v8 = vld.sshfl [vmem:[#allocation1 + $0x18] sm:$0xff pattern:$0x75316420]  ;;  %v73_v9 = vsel %vm67_vm0, %v61_v7, 0.0  ;;  %v53_v19 = vld [vmem:[#allocation2] sm:$0x3] }
  0x17   :  { %v74_v10 = vsel %vm67_vm0, %v62_v8, 0.0 }
  0x18   :  { %71 = vadd.xlane.f32.xlu0 %v70_v6  ;;  %v75_v11 = vadd.f32 %v74_v10, %v73_v9 }
  0x20   :  { %76 = vadd.xlane.f32.xlu0 %v75_v11 }
  0x8b   :  { %v72_v14 = vpop.xlane.xlu0 %71 }
  0x8c   :  { %v82_v18 = vperm.slane %v72_v14, %v81_v16 }
  0x93   :  { %v77_v17 = vpop.xlane.xlu0 %76 }
  0x94   :  { %v83_v20 = vperm.slane %v77_v17, %v81_v16 }
  0x96   :  { %v85_v21 = vsel %vm84_vm2, %v83_v20, %v82_v18 }
  0x97   :  { %v87_v22 = vadd.f32 %v85_v21, %v53_v19 }
  0x99   :  { %89 = vst.msk [vmem:[#allocation2] sm:$0x3] %vm49_vm1, %v87_v22 }
  0xa0   :  { %v93_v23 = vld [vmem:[#allocation2] sm:$0x3] }
  0xa1   :  { %146 = vmatmul.msk.f32.vlgmr.msra.gmra.mxu0 %vm99_vm3, %v93_v23 }
 0x11e   :  { %v123_v25 = vpop.f32.mrf.mxu0 }
 0x11f   :  { %v124_v26 = vadd.f32 %v153_v24, %v123_v25 }
 0x121   :  { %126 = vst [vmem:[#allocation8] sm:$0x3] %v124_v26 }
 0x122   :  { %137 = dma.vmem_to_hbm [thread:$0]  %s133_s25, 32, %s135_s28, [#allocation5]  }
 0x123   :  { %230 = dma.done.wait [#allocation5], 32  }
 0x124   :  { %231 = vsyncadd [#allocation5], 4294967264 }
 0x125   :  { %142 = vsyncpa [#allocation4], 1 }
 0x126   :  { %143 = vsyncpa [#allocation7], 1 }
 0x127   :  { %144 = vsyncpa [#allocation5], 1 }

// kernel: tpu_custom_call.1
= control target key start
LH: loop header
LB: loop body
LE: loop exit
PB: predicated region body
PF: predicated region fallthrough
CT: control target
= control target key end

     0   :  { %8 = vsyncpa [#allocation4], 0  ;;  %s275_s0 = inlined_call_operand.hbm [shape: f32[2,4,256], index: 0, kind: input, shape index: {}]   ;;  %s276_s1 = inlined_call_operand.hbm [shape: f32[4,128], index: 1, kind: input, shape index: {}]   ;;  %s277_s2 = inlined_call_operand.vmem [shape: f32[1,128], index: 2, kind: input, shape index: {}]   ;;  %s278_s3 = inlined_call_operand.hbm [shape: f32[2,128], index: 3, kind: output, shape index: {}]  }
   0x1   :  { %9 = vsyncpa [#allocation7], 0 }
   0x2   :  { %10 = vsyncpa [#allocation5], 0  ;;  %s15_s14 = sshll.u32 %s275_s0, 4  ;;  %s232_s15 = smov [#allocation3]   ;;  %s16_s14 = int_to_ptr.hbm [resolvable:$true] %s15_s14 }
   0x3   :  { %s17_s16 = sshll.u32 %s232_s15, 4  ;;  %s29_s19 = sshll.u32 %s276_s1, 4  ;;  %s18_s16 = int_to_ptr.vmem [resolvable:$true] %s17_s16  ;;  %s30_s19 = int_to_ptr.hbm [resolvable:$true] %s29_s19 }
   0x4   :  { %s233_s20 = smov 128   ;;  %s234_s21 = smov 8  }
   0x5   :  { %23 = dma.hbm_to_vmem [thread:$0]  %s16_s14, 256, %s18_s16, [#allocation4], %s233_s20, %s233_s20, %s234_s21  }
   0x6   :  { %s235_s22 = smov [#allocation6]  }
   0x7   :  { %s31_s23 = sshll.u32 %s235_s22, 4  ;;  %s32_s23 = int_to_ptr.vmem [resolvable:$true] %s31_s23 }
   0x8   :  { %34 = dma.hbm_to_vmem [thread:$0]  %s30_s19, 64, %s32_s23, [#allocation7]  }
   0x9   :  { %226 = dma.done.wait [#allocation4], 256  }
   0xa   :  { %227 = vsyncadd [#allocation4], 4294967040 }
   0xb   :  { %228 = dma.done.wait [#allocation7], 64  }
   0xc   :  { %229 = vsyncadd [#allocation7], 4294967232  ;;  %v51_v0 = vld [vmem:[#allocation3] sm:$0xff]  ;;  %v52_v1 = vld [vmem:[#allocation3 + $0x8] sm:$0xff]  ;;  %vm67_vm0 = vcmask 1043456   ;;  %vm49_vm1 = vcmask 25600   ;;  %v80_v15 = vlaneseq }
   0xd   :  { %56 = vst [vmem:[#allocation1] ss:$2 sm:$0xff] %v51_v0  ;;  %v236_v12 = vmov 0.0   ;;  %v94_v13 = vld [vmem:[#allocation6] sm:$0xf]  ;;  %vm84_vm2 = vcmask 1041409  }
   0xe   :  { %60 = vst [vmem:[#allocation1 + $0x10] ss:$2 sm:$0xff] %v52_v1  ;;  %145 = vmatpush.msk.msra.mxu0 %vm67_vm0, %v94_v13  ;;  %v81_v16 = vand.u32 127, %v80_v15  ;;  %vm99_vm3 = vcmask 31744   ;;  %v153_v24 = vld [vmem:[%s277_s2] ss:$0 sm:$0xff] }
   0xf   :  { %50 = vst.msk [vmem:[#allocation2] sm:$0x3] %vm49_vm1, %v236_v12  ;;  %s237_s24 = smov [#allocation8]   ;;  %s134_s28 = sshll.u32 %s278_s3, 4  ;;  %s135_s28 = int_to_ptr.hbm [resolvable:$true] %s134_s28 }
  0x10   :  { %s132_s25 = sshll.u32 %s237_s24, 4  ;;  %s133_s25 = int_to_ptr.vmem [resolvable:$true] %s132_s25 }
  0x14   :  { %v57_v2 = vld.sshfl [vmem:[#allocation1] sm:$0xff pattern:$0x75316420]  ;;  %v58_v3 = vld.sshfl [vmem:[#allocation1 + $0x8] sm:$0xff pattern:$0x75316420] }
  0x15   :  { %v68_v4 = vsel %vm67_vm0, %v57_v2, 0.0  ;;  %v69_v5 = vsel %vm67_vm0, %v58_v3, 0.0  ;;  %v61_v7 = vld.sshfl [vmem:[#allocation1 + $0x10] sm:$0xff pattern:$0x75316420] }
  0x16   :  { %v70_v6 = vadd.f32 %v69_v5, %v68_v4  ;;  %v62_v8 = vld.sshfl [vmem:[#allocation1 + $0x18] sm:$0xff pattern:$0x75316420]  ;;  %v73_v9 = vsel %vm67_vm0, %v61_v7, 0.0  ;;  %v53_v19 = vld [vmem:[#allocation2] sm:$0x3] }
  0x17   :  { %v74_v10 = vsel %vm67_vm0, %v62_v8, 0.0 }
  0x18   :  { %71 = vadd.xlane.f32.xlu0 %v70_v6  ;;  %v75_v11 = vadd.f32 %v74_v10, %v73_v9 }
  0x20   :  { %76 = vadd.xlane.f32.xlu0 %v75_v11 }
  0x8b   :  { %v72_v14 = vpop.xlane.xlu0 %71 }
  0x8c   :  { %v82_v18 = vperm.slane %v72_v14, %v81_v16 }
  0x93   :  { %v77_v17 = vpop.xlane.xlu0 %76 }
  0x94   :  { %v83_v20 = vperm.slane %v77_v17, %v81_v16 }
  0x96   :  { %v85_v21 = vsel %vm84_vm2, %v83_v20, %v82_v18 }
  0x97   :  { %v87_v22 = vadd.f32 %v85_v21, %v53_v19 }
  0x99   :  { %89 = vst.msk [vmem:[#allocation2] sm:$0x3] %vm49_vm1, %v87_v22 }
  0xa0   :  { %v93_v23 = vld [vmem:[#allocation2] sm:$0x3] }
  0xa1   :  { %146 = vmatmul.msk.f32.vlgmr.msra.gmra.mxu0 %vm99_vm3, %v93_v23 }
 0x11e   :  { %v123_v25 = vpop.f32.mrf.mxu0 }
 0x11f   :  { %v124_v26 = vadd.f32 %v153_v24, %v123_v25 }
 0x121   :  { %126 = vst [vmem:[#allocation8] sm:$0x3] %v124_v26 }
 0x122   :  { %137 = dma.vmem_to_hbm [thread:$0]  %s133_s25, 32, %s135_s28, [#allocation5]  }
 0x123   :  { %230 = dma.done.wait [#allocation5], 32  }
 0x124   :  { %231 = vsyncadd [#allocation5], 4294967264 }
 0x125   :  { %142 = vsyncpa [#allocation4], 1 }
 0x126   :  { %143 = vsyncpa [#allocation7], 1 }
 0x127   :  { %144 = vsyncpa [#allocation5], 1 }

</bundles_post_ra>
